<compile_context>
chip_gen: v6e
topology: v6e:2x2x1
jax: 0.10.0
libtpu: 0.0.40
codegen_flags: <defaults>
</compile_context>

<pallas_src>
import functools

import jax
import jax.numpy as jnp
from jax.experimental import pallas as pl
from jax.experimental.pallas import tpu as pltpu


_SMALL_INPUT_BYTES = 2 * 1024 * 1024   # below this: single-block fast path
_PER_BUFFER_BYTES = 8 * 1024 * 1024    # target bytes for one pipelined input buffer
_MAX_TILE_ROWS = 2048
_VMEM_LIMIT_BYTES = 32 * 1024 * 1024   # 2 x 8 MiB double-buffered input + slack;
                                       # raises v5e's 16 MiB default, fits v6e/v7x.


def _num_tensorcores_per_chip():
    """2 on megacore (v4 / v5p) and v7x chips, else 1 (conservative fallback)."""
    try:
        kind = jax.devices()[0].device_kind.lower()
    except Exception:
        return 1
    return 2 if any(tag in kind for tag in ("v4", "v5p", "v7")) else 1


def _choose_col_tile(n_cols):
    """Full-width D on single-TC chips (contiguous DMA, fewest grid steps).
    On 2-TC chips split D into exactly two 128-aligned halves so the leading
    'parallel' grid axis hands one wide half to each core."""
    if _num_tensorcores_per_chip() >= 2 and n_cols >= 512 and n_cols % 256 == 0:
        return n_cols // 2
    return n_cols


def _choose_row_tile(n_rows, tile_cols, dtype):
    """Size the row tile against the *actual* (tile_rows, tile_cols) block so
    each pipelined buffer sits near the ~8 MiB HBM-roofline sweet spot, then
    round down to the dtype-specific sublane multiple."""
    itemsize = jnp.dtype(dtype).itemsize
    sub = max(8, 32 // itemsize)         # 8 for f32, 16 for bf16, 32 for int8/fp8
    max_rows = max(1, _PER_BUFFER_BYTES // max(tile_cols * itemsize, 1))
    tn = min(n_rows, max_rows, _MAX_TILE_ROWS)
    if tn >= sub:
        return (tn // sub) * sub
    # Either N itself is tiny (full-extent block is legal) or a huge tile_cols
    # forces a sub-sublane row count (prefer a legal sublane-multiple block).
    return n_rows if n_rows < sub else sub


def _mean_dim0_small_kernel(x_ref, o_ref, *, inv_n):
    # Whole array resident in VMEM: one reduce + one scale.
    x = x_ref[...].astype(jnp.float32)
    o_ref[...] = (jnp.sum(x, axis=0, keepdims=True) * inv_n).astype(o_ref.dtype)


def _mean_dim0_kernel(x_ref, o_ref, acc_ref, *, n_rows, tile_rows, needs_mask, inv_n):
    # x_ref:   (tile_rows, tile_cols) input tile
    # o_ref:   (1, tile_cols) output tile, resident across the reduction axis
    # acc_ref: (8, tile_cols) f32 sublane-partial accumulator scratch
    n_step = pl.program_id(1)
    last_step = pl.num_programs(1) - 1

    @pl.when(n_step == 0)
    def _init():
        acc_ref[...] = jnp.zeros_like(acc_ref)

    def _accumulate(x):
        # Keep 8 sublane partial sums so per-tile work is lane-parallel VALU
        # adds only; the single cross-sublane (XLU) reduce happens in finalize.
        if tile_rows % 8 == 0:
            acc_ref[...] += jnp.sum(
                x.reshape(tile_rows // 8, 8, x.shape[-1]), axis=0
            )
        else:
            # Non-sublane-multiple row tile (tiny N): plain row reduce.
            acc_ref[0:1, :] += jnp.sum(x, axis=0, keepdims=True)

    if needs_mask:
        # Only the last tile can be ragged; every other step stays a pure
        # streaming accumulate (no iota/compare/select on the hot path).
        @pl.when(n_step != last_step)
        def _full_tile():
            _accumulate(x_ref[...].astype(jnp.float32))

        @pl.when(n_step == last_step)
        def _ragged_tile():
            x = x_ref[...].astype(jnp.float32)
            row_ids = n_step * tile_rows + jax.lax.broadcasted_iota(
                jnp.int32, x.shape, 0
            )
            _accumulate(jnp.where(row_ids < n_rows, x, 0.0))
    else:
        _accumulate(x_ref[...].astype(jnp.float32))

    @pl.when(n_step == last_step)
    def _finalize():
        total = jnp.sum(acc_ref[...], axis=0, keepdims=True)
        o_ref[...] = (total * inv_n).astype(o_ref.dtype)


def readout_forward(x, *, tile_rows=None, tile_cols=None, force_tiled=False):
    """Equivalent of ReadoutLayer.forward: mean over dim 0.  x: (N, D) -> (D,)."""
    N, D = x.shape
    inv_n = 1.0 / N
    itemsize = jnp.dtype(x.dtype).itemsize

    small = (N * D * itemsize) <= _SMALL_INPUT_BYTES
    if small and not force_tiled and tile_rows is None and tile_cols is None:
        out = pl.pallas_call(
            functools.partial(_mean_dim0_small_kernel, inv_n=inv_n),
            out_shape=jax.ShapeDtypeStruct((1, D), x.dtype),
        )(x)
        return out[0]

    if tile_cols is None:
        tile_cols = _choose_col_tile(D)
    if tile_rows is None:
        tile_rows = _choose_row_tile(N, tile_cols, x.dtype)
    tile_rows = min(tile_rows, N)
    needs_mask = (N % tile_rows) != 0
    grid = (D // tile_cols, pl.cdiv(N, tile_rows))

    kernel = functools.partial(
        _mean_dim0_kernel,
        n_rows=N,
        tile_rows=tile_rows,
        needs_mask=needs_mask,
        inv_n=inv_n,
    )

    out = pl.pallas_call(
        kernel,
        out_shape=jax.ShapeDtypeStruct((1, D), x.dtype),
        grid_spec=pltpu.PrefetchScalarGridSpec(
            num_scalar_prefetch=0,
            grid=grid,
            in_specs=[
                pl.BlockSpec((tile_rows, tile_cols), lambda d, n: (n, d)),
            ],
            out_specs=pl.BlockSpec((1, tile_cols), lambda d, n: (0, d)),
            scratch_shapes=[pltpu.VMEM((8, tile_cols), jnp.float32)],
        ),
        compiler_params=pltpu.CompilerParams(
            # D axis independent ("parallel", sharded across cores on 2-TC
            # chips); N axis is the reduction ("arbitrary", output resident).
            dimension_semantics=("parallel", "arbitrary"),
            vmem_limit_bytes=_VMEM_LIMIT_BYTES,
        ),
    )(x)
    return out[0]  # (D,), matching torch.mean(x, dim=0)


def init_readout_params(key, embed_dim):
    """Deterministic init of the (unused-in-forward) MLP parameters, mirroring
    nn.Linear(embed_dim, embed_dim) -> ReLU -> nn.Linear(embed_dim, 1)."""
    k1, k2, k3, k4 = jax.random.split(key, 4)
    bound1 = 1.0 / jnp.sqrt(embed_dim)
    w1 = jax.random.uniform(k1, (embed_dim, embed_dim), jnp.float32, -bound1, bound1)
    b1 = jax.random.uniform(k2, (embed_dim,), jnp.float32, -bound1, bound1)
    w2 = jax.random.uniform(k3, (1, embed_dim), jnp.float32, -bound1, bound1)
    b2 = jax.random.uniform(k4, (1,), jnp.float32, -bound1, bound1)
    # NOTE: forward() never touches these — kept only to match the module's __init__.
    return {"w1": w1, "b1": b1, "w2": w2, "b2": b2}


if __name__ == "__main__":
    key = jax.random.PRNGKey(0)
    kx, kx2, kx3, kp = jax.random.split(key, 4)

    # --- 1. module-sized demo (seq=8 nodes, embed_dim=32): fast path ---
    N, embed_dim = 8, 32
    x = jax.random.normal(kx, (N, embed_dim), dtype=jnp.float32)
    params = init_readout_params(kp, embed_dim)  # defined but unused in forward
    out = jax.block_until_ready(readout_forward(x))
    ref = jnp.mean(x, axis=0)
    assert out.shape == (embed_dim,)
    assert jnp.allclose(out, ref, atol=1e-6, rtol=1e-6)

    # --- 2. tiled path with ragged tail (mask gated to the last step) ---
    N2, D2 = 100, 128
    x2 = jax.random.normal(kx2, (N2, D2), dtype=jnp.float32)
    out2 = jax.block_until_ready(
        readout_forward(x2, tile_rows=8, force_tiled=True))
    ref2 = jnp.mean(x2, axis=0)
    assert out2.shape == (D2,)
    assert jnp.allclose(out2, ref2, atol=1e-5, rtol=1e-5)

    # --- 3. tiled path, multiple blocks on both grid axes, exact tiling ---
    N3, D3 = 96, 256
    x3 = jax.random.normal(kx3, (N3, D3), dtype=jnp.float32)
    out3 = jax.block_until_ready(
        readout_forward(x3, tile_rows=32, tile_cols=128, force_tiled=True))
    ref3 = jnp.mean(x3, axis=0)
    assert out3.shape == (D3,)
    assert jnp.allclose(out3, ref3, atol=1e-5, rtol=1e-5)

    print("KERNEL_OK")
</pallas_src>

<mosaic_0001>
module attributes {stable_mosaic.version = 11 : i64} {
  func.func @_mean_dim0_small_kernel(%arg0: memref<8x32xf32, #tpu.memory_space<vmem>>, %arg1: memref<1x32xf32, #tpu.memory_space<vmem>>) attributes {dimension_semantics = [], scalar_prefetch = 0 : i64, scratch_operands = 0 : i64, tpu.core_type = #tpu.core_type<tc>} {
    %c0 = arith.constant 0 : index
    %c0_0 = arith.constant 0 : index
    %0 = vector.load %arg0[%c0, %c0_0] : memref<8x32xf32, #tpu.memory_space<vmem>>, vector<8x32xf32>
    %cst = arith.constant dense<0.000000e+00> : vector<32xf32>
    %1 = vector.multi_reduction <add>, %0, %cst [0] : vector<8x32xf32> to vector<32xf32>
    %2 = vector.shape_cast %1 : vector<32xf32> to vector<1x32xf32>
    %cst_1 = arith.constant 1.250000e-01 : f32
    %3 = vector.broadcast %cst_1 : f32 to vector<1x32xf32>
    %4 = arith.mulf %2, %3 : vector<1x32xf32>
    %c0_2 = arith.constant 0 : index
    %c0_3 = arith.constant 0 : index
    %5 = vector.load %arg1[%c0_2, %c0_3] : memref<1x32xf32, #tpu.memory_space<vmem>>, vector<1x32xf32>
    tpu.vector_store %arg1[%c0_2, %c0_3], %4 {strides = array<i32>} : memref<1x32xf32, #tpu.memory_space<vmem>>, vector<1x32xf32>,
    return
  }
}

</mosaic_0001>

<bundles_post_ra>
// kernel: tpu_custom_call.1
= control target key start
LH: loop header
LB: loop body
LE: loop exit
PB: predicated region body
PF: predicated region fallthrough
CT: control target
= control target key end

     0   :  { %6 = vsyncpa [#allocation3], 0  ;;  %s112_s0 = inlined_call_operand.hbm [shape: f32[8,32], index: 0, kind: input, shape index: {}]   ;;  %s113_s1 = inlined_call_operand.hbm [shape: f32[1,32], index: 1, kind: output, shape index: {}]  }
   0x1   :  { %7 = vsyncpa [#allocation4], 0  ;;  %s94_s6 = smov [#allocation2]  }
   0x2   :  { %s14_s7 = sshll.u32 %s94_s6, 4  ;;  %s15_s7 = int_to_ptr.vmem [resolvable:$true] %s14_s7 }
   0x3   :  { %s58_s8 = scalar_lea.vmem %s15_s7, 128  ;;  %p63_p1 = scmp.lt.s32.totalorder %s15_s7, %s15_s7 }
   0x4   :  { %p59_p0 = scmp.ne.s32.totalorder %s15_s7, %s58_s8  ;;  %p64_p2 = scmp.lt.s32.totalorder %s58_s8, %s58_s8 }
   0x6   :  { %p65_p3 = por %p64_p2, %p63_p1 }
   0x8   :  { %p66_p4 = pnand %p65_p3, %p59_p0 }
   0xa   :  { %69 = shalt.err (!%p66_p4)
}
   0xb   :  { %17 = dma.hbm_to_vmem [thread:$0]  %s112_s0, 128, %s15_s7, [#allocation3]  }
   0xc   :  { %90 = dma.done.wait [#allocation3], 128  }
   0xd   :  { %91 = vsyncadd [#allocation3], 4294967168  ;;  %vm22_vm0 = vcmask 261120   ;;  %v21_v0 = vld [vmem:[#allocation2] sm:$0xff]  ;;  %s95_s11 = smov [#allocation5]   ;;  %vm31_vm1 = vcmask 253952  }
   0xe   :  { %v23_v1 = vsel %vm22_vm0, %v21_v0, 0.0  ;;  %s39_s12 = sshll.u32 %s95_s11, 4  ;;  %s40_s12 = int_to_ptr.vmem [resolvable:$true] %s39_s12 }
   0xf   :  { %v24_v2 = vrot.slane %v23_v1, 4  ;;  %s70_s13 = scalar_lea.vmem %s40_s12, 16  ;;  %s74_s0 = scalar_lea.vmem %s40_s12, 32 }
  0x10   :  { %p71_p5 = scmp.ne.s32.totalorder %s40_s12, %s70_s13  ;;  %p75_p6 = scmp.lt.s32.totalorder %s40_s12, %s40_s12 }
  0x11   :  { %v25_v3 = vadd.f32 %v24_v2, %v23_v1  ;;  %p76_p7 = scmp.lt.s32.totalorder %s74_s0, %s70_s13 }
  0x13   :  { %v26_v4 = vrot.slane %v25_v3, 2  ;;  %p77_p8 = por %p76_p7, %p75_p6 }
  0x15   :  { %v27_v5 = vadd.f32 %v26_v4, %v25_v3  ;;  %p78_p9 = pnand %p77_p8, %p71_p5 }
  0x17   :  { %v28_v6 = vrot.slane %v27_v5, 1 }
  0x19   :  { %v29_v7 = vadd.f32 %v28_v6, %v27_v5 }
  0x1b   :  { %v30_v8 = vmul.f32 0.125, %v29_v7 }
  0x1d   :  { %32 = vst.msk [vmem:[#allocation5] sm:$0x1] %vm31_vm1, %v30_v8 }
  0x1e   :  { %81 = shalt.err (!%p78_p9)
}
  0x1f   :  { %42 = dma.vmem_to_hbm [thread:$0]  %s40_s12, 16, %s113_s1, [#allocation4]  }
  0x20   :  { %92 = dma.done.wait [#allocation4], 16  }
  0x21   :  { %93 = vsyncadd [#allocation4], 4294967280 }
  0x22   :  { %46 = vsyncpa [#allocation3], 1 }
  0x23   :  { %47 = vsyncpa [#allocation4], 1 }

</bundles_post_ra>
